<compile_context>
chip_gen: v7x
topology: tpu7x:2x2x1
jax: 0.10.0
libtpu: 0.0.40
codegen_flags: <defaults>
</compile_context>

<pallas_src>
import functools

import jax
import jax.numpy as jnp
from jax.experimental import pallas as pl
from jax.experimental.pallas import tpu as pltpu


_ROW_QUANTUM = 104  # lcm(8, 13): sublane-aligned AND aligned with the 13-periodic weights


def _choose_tile_rows(n_rows, n_classes):
    """Rows per block: keeps ~1 MiB of f32 work per block; multiple of 104 when tiled."""
    lane_bytes = max(n_classes, 128) * 4            # f32 intermediates, lane-padded to 128
    rows = (1 << 20) // lane_bytes
    rows = max(_ROW_QUANTUM, (rows // _ROW_QUANTUM) * _ROW_QUANTUM)
    if n_rows <= rows:
        return n_rows                               # single exact block (N is a multiple of 13)
    return rows


def _weighted_ce_block_kernel(logits_ref, tgt_ref, w_ref, out_ref, *, n_rows):
    i = pl.program_id(0)
    tile_rows = logits_ref.shape[0]

    logits = logits_ref[...].astype(jnp.float32)     # (T, C); cast in VMEM, not in HBM
    tgt = tgt_ref[...]                               # (T, 1) int32
    w = w_ref[...]                                   # (T, 1) f32, 13-periodic pattern

    # Numerically-stable CE, reusing shifted logits for both terms:
    #   loss = log(sum(exp(x - max))) - (x[tgt] - max)
    row_max = jnp.max(logits, axis=-1, keepdims=True)          # (T, 1)
    shifted = logits - row_max                                  # (T, C)
    sum_exp = jnp.sum(jnp.exp(shifted), axis=-1, keepdims=True)
    col_ids = jax.lax.broadcasted_iota(jnp.int32, shifted.shape, dimension=1)
    picked = jnp.sum(jnp.where(col_ids == tgt, shifted, 0.0), axis=-1, keepdims=True)
    losses = jnp.log(sum_exp) - picked                          # (T, 1)

    # Mask rows past the true end of the data (boundary-block tail).
    row_ids = i * tile_rows + jax.lax.broadcasted_iota(jnp.int32, (tile_rows, 1), 0)
    weighted = jnp.where(row_ids < n_rows, losses * w, 0.0)
    psum = jnp.sum(weighted)                                    # scalar partial sum

    lane = jax.lax.broadcasted_iota(jnp.int32, out_ref.shape, dimension=1)
    out_ref[...] = jnp.where(lane == 0, psum, 0.0).astype(jnp.float32)


def custom_loss(srcY, tgtY, factor=2.0):
    """srcY: (B, 13, C) logits (any float dtype), tgtY: (B, 13) int class ids."""
    B, T, C = srcY.shape
    assert T == 13 and tgtY.shape == (B, T), "module's weight vector fixes T == 13"
    N = B * T

    logits_flat = srcY.reshape(N, C)                 # native dtype, no f32 upcast in HBM
    tgt_flat = tgtY.reshape(N, 1).astype(jnp.int32)

    tile_rows = _choose_tile_rows(N, C)
    base = [float(factor), 1.0, 1.0 / float(factor)] * 4 + [1.0]      # 13 weights
    w_tile = jnp.asarray(base * (tile_rows // 13), dtype=jnp.float32).reshape(tile_rows, 1)

    grid_n = pl.cdiv(N, tile_rows)
    kernel = functools.partial(_weighted_ce_block_kernel, n_rows=N)
    partials = pl.pallas_call(
        kernel,
        out_shape=jax.ShapeDtypeStruct((1, grid_n * 128), jnp.float32),
        grid=(grid_n,),
        in_specs=[
            pl.BlockSpec((tile_rows, C), lambda i: (i, 0)),    # logits row tile
            pl.BlockSpec((tile_rows, 1), lambda i: (i, 0)),    # targets row tile
            pl.BlockSpec((tile_rows, 1), lambda i: (0, 0)),    # shared weight column
        ],
        out_specs=pl.BlockSpec((1, 128), lambda i: (0, i)),    # per-block partial sum
        compiler_params=pltpu.CompilerParams(
            dimension_semantics=("parallel",),
            vmem_limit_bytes=32 * 1024 * 1024,
        ),
    )(logits_flat, tgt_flat, w_tile)

    return jnp.sum(partials) / jnp.float32(N)


def _reference_loss(srcY, tgtY, factor=2.0):
    B, T, C = srcY.shape
    base = jnp.array([factor, 1.0, 1.0 / factor] * 4 + [1.0], dtype=jnp.float32)[None, :]
    logp = jax.nn.log_softmax(srcY.reshape(-1, C).astype(jnp.float32), axis=-1)
    losses = -jnp.take_along_axis(logp, tgtY.reshape(-1, 1), axis=-1).reshape(B, T)
    return jnp.mean(losses * base)


if __name__ == "__main__":
    key = jax.random.PRNGKey(0)
    k1, k2, k3, k4 = jax.random.split(key, 4)

    # Small f32 case: single exact block.
    B, T, C = 2, 13, 32
    srcY = jax.random.normal(k1, (B, T, C), dtype=jnp.float32)
    tgtY = jax.random.randint(k2, (B, T), 0, C, dtype=jnp.int32)
    got = jax.block_until_ready(custom_loss(srcY, tgtY))
    want = jax.block_until_ready(_reference_loss(srcY, tgtY))
    assert jnp.allclose(got, want, rtol=1e-5, atol=1e-5), (got, want)

    # bf16 logits, multiple row blocks: exercises pipelined tiling, native-dtype
    # DMA (no upcast), and boundary-row masking.
    B2 = 160
    srcY2 = jax.random.normal(k3, (B2, T, C), dtype=jnp.bfloat16)
    tgtY2 = jax.random.randint(k4, (B2, T), 0, C, dtype=jnp.int32)
    got2 = jax.block_until_ready(custom_loss(srcY2, tgtY2, factor=3.0))
    want2 = jax.block_until_ready(_reference_loss(srcY2, tgtY2, factor=3.0))
    assert jnp.allclose(got2, want2, rtol=1e-4, atol=1e-4), (got2, want2)

    print("KERNEL_OK")
</pallas_src>

<mosaic_0001>
module attributes {stable_mosaic.version = 11 : i64} {
  func.func @_weighted_ce_block_kernel(%arg0: i32, %arg1: memref<26x32xf32, #tpu.memory_space<vmem>>, %arg2: memref<26x1xi32, #tpu.memory_space<vmem>>, %arg3: memref<26x1xf32, #tpu.memory_space<vmem>>, %arg4: memref<1x128xf32, #tpu.memory_space<vmem>>) attributes {dimension_semantics = [#tpu.dimension_semantics<parallel>], iteration_bounds = array<i64: 1>, scalar_prefetch = 0 : i64, scratch_operands = 0 : i64, tpu.core_type = #tpu.core_type<tc>, window_params = [{transform_indices = @transform_0, window_bounds = array<i64: 26, 32>}, {transform_indices = @transform_1, window_bounds = array<i64: 26, 1>}, {pipeline_mode = #tpu.pipeline_mode<synchronous>, transform_indices = @transform_2, window_bounds = array<i64: 26, 1>}, {transform_indices = @transform_3, window_bounds = array<i64: 1, 128>}]} {
    %c0 = arith.constant 0 : index
    %c0_0 = arith.constant 0 : index
    %0 = vector.load %arg1[%c0, %c0_0] : memref<26x32xf32, #tpu.memory_space<vmem>>, vector<26x32xf32>
    %c0_1 = arith.constant 0 : index
    %c0_2 = arith.constant 0 : index
    %1 = vector.load %arg2[%c0_1, %c0_2] : memref<26x1xi32, #tpu.memory_space<vmem>>, vector<26x1xi32>
    %c0_3 = arith.constant 0 : index
    %c0_4 = arith.constant 0 : index
    %2 = vector.load %arg3[%c0_3, %c0_4] : memref<26x1xf32, #tpu.memory_space<vmem>>, vector<26x1xf32>
    %cst = arith.constant dense<0xFF800000> : vector<26xf32>
    %3 = vector.multi_reduction <maximumf>, %0, %cst [1] : vector<26x32xf32> to vector<26xf32>
    %4 = vector.shape_cast %3 : vector<26xf32> to vector<26x1xf32>
    %5 = vector.broadcast %4 : vector<26x1xf32> to vector<26x32xf32>
    %6 = arith.subf %0, %5 : vector<26x32xf32>
    %7 = math.exp %6 : vector<26x32xf32>
    %cst_5 = arith.constant dense<0.000000e+00> : vector<26xf32>
    %8 = vector.multi_reduction <add>, %7, %cst_5 [1] : vector<26x32xf32> to vector<26xf32>
    %9 = vector.shape_cast %8 : vector<26xf32> to vector<26x1xf32>
    %10 = tpu.iota {dimensions = array<i32: 1>} : vector<26x32xi32>
    %11 = vector.broadcast %1 : vector<26x1xi32> to vector<26x32xi32>
    %12 = arith.cmpi eq, %10, %11 : vector<26x32xi32>
    %cst_6 = arith.constant 0.000000e+00 : f32
    %13 = vector.broadcast %cst_6 : f32 to vector<26x32xf32>
    %14 = arith.select %12, %6, %13 : vector<26x32xi1>, vector<26x32xf32>
    %cst_7 = arith.constant dense<0.000000e+00> : vector<26xf32>
    %15 = vector.multi_reduction <add>, %14, %cst_7 [1] : vector<26x32xf32> to vector<26xf32>
    %16 = vector.shape_cast %15 : vector<26xf32> to vector<26x1xf32>
    %17 = math.log %9 : vector<26x1xf32>
    %18 = arith.subf %17, %16 : vector<26x1xf32>
    %c26_i32 = arith.constant 26 : i32
    %19 = arith.muli %arg0, %c26_i32 : i32
    %20 = tpu.iota {dimensions = array<i32: 0>} : vector<26x1xi32>
    %21 = vector.broadcast %19 : i32 to vector<26x1xi32>
    %22 = arith.addi %21, %20 : vector<26x1xi32>
    %c26_i32_8 = arith.constant 26 : i32
    %23 = vector.broadcast %c26_i32_8 : i32 to vector<26x1xi32>
    %24 = arith.cmpi slt, %22, %23 : vector<26x1xi32>
    %25 = arith.mulf %18, %2 : vector<26x1xf32>
    %cst_9 = arith.constant 0.000000e+00 : f32
    %26 = vector.broadcast %cst_9 : f32 to vector<26x1xf32>
    %27 = arith.select %24, %25, %26 : vector<26x1xi1>, vector<26x1xf32>
    %28 = vector.shape_cast %27 : vector<26x1xf32> to vector<1x26x1xf32>
    %cst_10 = arith.constant dense<0.000000e+00> : vector<1xf32>
    %29 = vector.multi_reduction <add>, %28, %cst_10 [1, 2] : vector<1x26x1xf32> to vector<1xf32>
    %30 = vector.shape_cast %29 : vector<1xf32> to vector<1x1x1xf32>
    %31 = vector.extract %30[0, 0, 0] : f32 from vector<1x1x1xf32>
    %32 = tpu.iota {dimensions = array<i32: 1>} : vector<1x128xi32>
    %c0_i32 = arith.constant 0 : i32
    %33 = vector.broadcast %c0_i32 : i32 to vector<1x128xi32>
    %34 = arith.cmpi eq, %32, %33 : vector<1x128xi32>
    %cst_11 = arith.constant 0.000000e+00 : f32
    %35 = vector.broadcast %31 : f32 to vector<1x128xf32>
    %36 = vector.broadcast %cst_11 : f32 to vector<1x128xf32>
    %37 = arith.select %34, %35, %36 : vector<1x128xi1>, vector<1x128xf32>
    %c0_12 = arith.constant 0 : index
    %c0_13 = arith.constant 0 : index
    %38 = vector.load %arg4[%c0_12, %c0_13] : memref<1x128xf32, #tpu.memory_space<vmem>>, vector<1x128xf32>
    tpu.vector_store %arg4[%c0_12, %c0_13], %37 {strides = array<i32>} : memref<1x128xf32, #tpu.memory_space<vmem>>, vector<1x128xf32>,
    return
  }
  func.func @transform_0(%arg0: i32) -> (i32, i32) {
    %c0_i32 = arith.constant 0 : i32
    %c0_i32_0 = arith.constant 0 : i32
    return %arg0, %c0_i32 : i32, i32
  }
  func.func @transform_1(%arg0: i32) -> (i32, i32) {
    %c0_i32 = arith.constant 0 : i32
    %c0_i32_0 = arith.constant 0 : i32
    return %arg0, %c0_i32 : i32, i32
  }
  func.func @transform_2(%arg0: i32) -> (i32, i32) {
    %c0_i32 = arith.constant 0 : i32
    %c0_i32_0 = arith.constant 0 : i32
    %c0_i32_1 = arith.constant 0 : i32
    return %c0_i32, %c0_i32_0 : i32, i32
  }
  func.func @transform_3(%arg0: i32) -> (i32, i32) {
    %c0_i32 = arith.constant 0 : i32
    %c0_i32_0 = arith.constant 0 : i32
    return %c0_i32, %arg0 : i32, i32
  }
}

</mosaic_0001>

<bundles_post_ra>
// kernel: tpu_custom_call.1
= control target key start
LH: loop header
LB: loop body
LE: loop exit
PB: predicated region body
PF: predicated region fallthrough
CT: control target
= control target key end

     0   :  { %vm27_vm0 = vcmask 261120   ;;  %vm37_vm1 = vcmask 254976   ;;  %v216_v8 = vmov 0   ;;  %s305_s0 = inlined_call_operand.vmem [shape: f32[26,32], index: 0, kind: input, shape index: {}]   ;;  %s306_s1 = inlined_call_operand.vmem [shape: s32[26,1], index: 1, kind: input, shape index: {}]   ;;  %s307_s2 = inlined_call_operand.vmem [shape: f32[26,1], index: 2, kind: input, shape index: {}]   ;;  %s308_s3 = inlined_call_operand.hbm [shape: f32[1,128], index: 3, kind: output, shape index: {}]  }
   0x1   :  { %v17_v0 = vld [vmem:[%s305_s0 + $0x10] sm:$0xff]  ;;  %v15_v1 = vld [vmem:[%s305_s0] sm:$0xff]  ;;  %v18_v2 = vld [vmem:[%s305_s0 + $0x18] sm:$0x3]  ;;  %175 = vset.pattern.permute.xlu1 %v216_v8  ;;  %174 = vset.pattern.permute.xlu0 %v216_v8 }
   0x2   :  { %v34_v3 = vsel %vm27_vm0, %v17_v0, -inf  ;;  %v28_v4 = vsel %vm27_vm0, %v15_v1, -inf  ;;  %v16_v5 = vld [vmem:[%s305_s0 + $0x8] sm:$0xff]  ;;  %v38_v6 = vsel %vm37_vm1, %v18_v2, -inf }
   0x3   :  { %35 = vmax.xlane.f32.xlu1 %v34_v3  ;;  %29 = vmax.xlane.f32.xlu0 %v28_v4  ;;  %v31_v7 = vsel %vm27_vm0, %v16_v5, -inf }
   0x4   :  { %8 = vsyncpa [#allocation3], 0  ;;  %v20_v9 = vld [vmem:[%s306_s1 + $0x8] sm:$0xff]  ;;  %v21_v10 = vld [vmem:[%s306_s1 + $0x10] sm:$0xff]  ;;  %v65_v26 = vlaneseq  ;;  %vm134_vm6 = vcmask 7168   ;;  %vm140_vm8 = vcmask 1024  }
   0x5   :  { %v19_v11 = vld [vmem:[%s306_s1] sm:$0xff]  ;;  %v22_v12 = vld [vmem:[%s306_s1 + $0x18] sm:$0x3]  ;;  %v25_v63 = vld [vmem:[%s307_s2 + $0x10] sm:$0xff] }
   0x6   :  { %v266_v30 = vand.u32 127, %v65_v26  ;;  %v113_v56 = vshrl.u32 %v65_v26, 7  ;;  %v23_v59 = vld [vmem:[%s307_s2] sm:$0xff] }
   0x7   :  { %39 = vmax.xlane.f32.xlu1 %v38_v6  ;;  %32 = vmax.xlane.f32.xlu0 %v31_v7 }
   0x8   :  { %vm152_vm9 = vcmp.eq.s32.totalorder %v266_v30, 0 }
  0x18   :  { %71 = vperm.xlu1 %175, %v20_v9  }
  0x1c   :  { %74 = vperm.xlu1 %175, %v21_v10   ;;  %v26_v10 = vld [vmem:[%s307_s2 + $0x18] sm:$0x3] }
  0x1d   :  { %68 = vperm.xlu0 %174, %v19_v11  }
  0x20   :  { %77 = vperm.xlu1 %175, %v22_v12  }
  0x90   :  { %v36_v13 = vpop.xlane.xlu1 %35  ;;  %v30_v14 = vpop.xlane.xlu0 %29 }
  0x91   :  { %v43_v15 = vsub.f32 %v17_v0, %v36_v13  ;;  %v41_v16 = vsub.f32 %v15_v1, %v30_v14  ;;  %v24_v1 = vld [vmem:[%s307_s2 + $0x8] sm:$0xff]  ;;  %s217_s2 = smov [#allocation2]  }
  0x92   :  { %s162_s7 = sshll.u32 %s217_s2, 4  ;;  %s163_s7 = int_to_ptr.vmem [resolvable:$true] %s162_s7 }
  0x93   :  { %v49_v17 = vmul.f32 1.442695, %v43_v15  ;;  %v45_v18 = vmul.f32 1.442695, %v41_v16  ;;  %s192_s9 = scalar_lea.vmem %s163_s7, 16  ;;  %s196_s10 = scalar_lea.vmem %s163_s7, 32 }
  0x94   :  { %v40_v19 = vpop.xlane.xlu1 %39  ;;  %v33_v20 = vpop.xlane.xlu0 %32  ;;  %p193_p0 = scmp.ne.s32.totalorder %s163_s7, %s192_s9  ;;  %p197_p1 = scmp.lt.s32.totalorder %s163_s7, %s163_s7 }
  0x95   :  { %176 = vpow2.f32 %v49_v17  ;;  %v44_v21 = vsub.f32 %v18_v2, %v40_v19  ;;  %v42_v22 = vsub.f32 %v16_v5, %v33_v20  ;;  %v116_v5 = vadd.s32 24, %v113_v56  ;;  %p198_p2 = scmp.lt.s32.totalorder %s196_s10, %s192_s9 }
  0x96   :  { %178 = vpow2.f32 %v45_v18 }
  0x97   :  { %v51_v23 = vmul.f32 1.442695, %v44_v21  ;;  %v47_v24 = vmul.f32 1.442695, %v42_v22  ;;  %vm125_vm7 = vcmp.lt.s32.totalorder %v116_v5, 26  ;;  %p199_p3 = por %p198_p2, %p197_p1 }
  0x98   :  { %v72_v25 = vpop.permute.xlu1 %71 }
  0x99   :  { %180 = vpow2.f32 %v51_v23  ;;  %vm80_vm4 = vcmp.eq.s32.totalorder %v266_v30, %v72_v25  ;;  %p200_p4 = pnand %p199_p3, %p193_p0 }
  0x9a   :  { %182 = vpow2.f32 %v47_v24  ;;  %v84_v43 = vsel %vm80_vm4, %v42_v22, 0.0 }
  0x9b   :  { %v90_v44 = vsel %vm27_vm0, %v84_v43, 0.0 }
  0x9c   :  { %v75_v29 = vpop.permute.xlu1 %74  ;;  %v69_v35 = vpop.permute.xlu0 %68 }
  0x9d   :  { %vm81_vm2 = vcmp.eq.s32.totalorder %v266_v30, %v75_v29  ;;  %vm79_vm3 = vcmp.eq.s32.totalorder %v266_v30, %v69_v35 }
  0x9e   :  { %v85_v37 = vsel %vm81_vm2, %v43_v15, 0.0  ;;  %v83_v40 = vsel %vm79_vm3, %v41_v16, 0.0 }
  0x9f   :  { %v177_v27 = vpop.eup %176  ;;  %v93_v39 = vsel %vm27_vm0, %v85_v37, 0.0  ;;  %v87_v42 = vsel %vm27_vm0, %v83_v40, 0.0 }
  0xa0   :  { %v179_v28 = vpop.eup %178  ;;  %v59_v33 = vsel %vm27_vm0, %v177_v27, 0.0  ;;  %v78_v41 = vpop.permute.xlu1 %77 }
  0xa1   :  { %v53_v31 = vsel %vm27_vm0, %v179_v28, 0.0  ;;  %vm82_vm5 = vcmp.eq.s32.totalorder %v266_v30, %v78_v41 }
  0xa2   :  { %54 = vadd.xlane.f32.xlu1 %v53_v31  ;;  %v86_v45 = vsel %vm82_vm5, %v44_v21, 0.0 }
  0xa3   :  { %v181_v32 = vpop.eup %180  ;;  %v96_v46 = vsel %vm37_vm1, %v86_v45, 0.0 }
  0xa4   :  { %v183_v34 = vpop.eup %182  ;;  %v62_v38 = vsel %vm37_vm1, %v181_v32, 0.0 }
  0xa5   :  { %v56_v36 = vsel %vm27_vm0, %v183_v34, 0.0 }
  0xa6   :  { %60 = vadd.xlane.f32.xlu1 %v59_v33  ;;  %57 = vadd.xlane.f32.xlu0 %v56_v36 }
  0xaa   :  { %63 = vadd.xlane.f32.xlu1 %v62_v38  ;;  %94 = vadd.xlane.f32.xlu0 %v93_v39 }
  0xae   :  { %88 = vadd.xlane.f32.xlu1 %v87_v42 }
  0xb2   :  { %91 = vadd.xlane.f32.xlu1 %v90_v44 }
  0xb6   :  { %97 = vadd.xlane.f32.xlu1 %v96_v46 }
 0x12f   :  { %v55_v47 = vpop.xlane.xlu1 %54 }
 0x130   :  { %184 = vlog2.f32 %v55_v47 }
 0x133   :  { %v61_v48 = vpop.xlane.xlu1 %60  ;;  %v58_v49 = vpop.xlane.xlu0 %57 }
 0x134   :  { %186 = vlog2.f32 %v61_v48 }
 0x135   :  { %188 = vlog2.f32 %v58_v49 }
 0x137   :  { %v64_v50 = vpop.xlane.xlu1 %63  ;;  %v95_v61 = vpop.xlane.xlu0 %94 }
 0x138   :  { %190 = vlog2.f32 %v64_v50 }
 0x13a   :  { %v185_v51 = vpop.eup %184 }
 0x13b   :  { %v100_v52 = vmul.f32 0.6931472, %v185_v51  ;;  %v89_v53 = vpop.xlane.xlu1 %88 }
 0x13d   :  { %v107_v55 = vsub.f32 %v100_v52, %v89_v53 }
 0x13e   :  { %v187_v54 = vpop.eup %186 }
 0x13f   :  { %v189_v57 = vpop.eup %188  ;;  %v104_v58 = vmul.f32 0.6931472, %v187_v54  ;;  %v92_v60 = vpop.xlane.xlu1 %91  ;;  %v126_v3 = vmul.f32 %v107_v55, %v23_v59 }
 0x140   :  { %v102_v62 = vmul.f32 0.6931472, %v189_v57 }
 0x141   :  { %v109_v0 = vsub.f32 %v104_v58, %v95_v61  ;;  %v135_v12 = vsel %vm134_vm6, %v126_v3, 0.0 }
 0x142   :  { %v191_v2 = vpop.eup %190  ;;  %v108_v4 = vsub.f32 %v102_v62, %v92_v60 }
 0x143   :  { %v106_v6 = vmul.f32 0.6931472, %v191_v2  ;;  %v98_v7 = vpop.xlane.xlu1 %97  ;;  %v128_v8 = vmul.f32 %v109_v0, %v25_v63 }
 0x144   :  { %v127_v9 = vmul.f32 %v108_v4, %v24_v1 }
 0x145   :  { %v110_v11 = vsub.f32 %v106_v6, %v98_v7  ;;  %v138_v16 = vsel %vm134_vm6, %v128_v8, 0.0 }
 0x146   :  { %v136_v13 = vsel %vm134_vm6, %v127_v9, 0.0 }
 0x147   :  { %v129_v14 = vmul.f32 %v110_v11, %v26_v10  ;;  %v137_v15 = vadd.f32 %v136_v13, %v135_v12 }
 0x149   :  { %v133_v17 = vsel %vm125_vm7, %v129_v14, 0.0  ;;  %v139_v18 = vadd.f32 %v138_v16, %v137_v15 }
 0x14a   :  { %v141_v19 = vsel %vm140_vm8, %v133_v17, 0.0 }
 0x14b   :  { %v142_v20 = vadd.f32 %v141_v19, %v139_v18 }
 0x14d   :  { %143 = vadd.xlane.f32.xlu0 %v142_v20 }
 0x1da   :  { %v144_v21 = vpop.xlane.xlu0 %143 }
 0x1db   :  { %v145_v22 = vrot.slane %v144_v21, 4 }
 0x1dd   :  { %v146_v23 = vadd.f32 %v145_v22, %v144_v21 }
 0x1df   :  { %v147_v24 = vrot.slane %v146_v23, 2 }
 0x1e1   :  { %v148_v25 = vadd.f32 %v147_v24, %v146_v23 }
 0x1e3   :  { %v149_v26 = vrot.slane %v148_v25, 1 }
 0x1e5   :  { %v150_v27 = vadd.f32 %v149_v26, %v148_v25 }
 0x1e7   :  { %170 = vpush %v150_v27 }
 0x218   :  { %s171_s8 = spop %170 }
 0x219   :  { %v153_v28 = vstv %s171_s8 }
 0x21a   :  { %v154_v29 = vsel %vm152_vm9, %v153_v28, 0.0 }
 0x21b   :  { %155 = vst [vmem:[#allocation2] sm:$0x1] %v154_v29 }
 0x21c   :  { %203 = shalt.err (!%p200_p4)
}
 0x21d   :  { %s204_s13 = scalar_lea.hbm %s308_s3, 16 }
 0x21e   :  { %p205_p5 = scmp.ne.s32.totalorder %s308_s3, %s204_s13  ;;  %p208_p6 = scmp.lt.u32.totalorder %s204_s13, %s308_s3 }
 0x220   :  { %p210_p7 = pnand %p208_p6, %p205_p5 }
 0x222   :  { %213 = shalt.err (!%p210_p7)
}
 0x223   :  { %165 = dma.vmem_to_hbm [thread:$0]  %s163_s7, 16, %s308_s3, [#allocation3]  }
 0x224   :  { %214 = dma.done.wait [#allocation3], 16  }
 0x225   :  { %215 = vsyncadd [#allocation3], 4294967280 }
 0x226   :  { %169 = vsyncpa [#allocation3], 1 }

</bundles_post_ra>
